<compile_context>
chip_gen: v7x
topology: tpu7x:2x2x1
jax: 0.10.0
libtpu: 0.0.40
codegen_flags: <defaults>
</compile_context>

<pallas_src>
import math
from functools import partial

import jax
import jax.numpy as jnp
from jax.experimental import pallas as pl
from jax.experimental.pallas import tpu as pltpu

S = 64.0           # arcface scale
M = 0.5            # arcface margin
EPS = 1e-7         # clamp eps (from module)
NORM_EPS = 1e-12   # F.normalize default eps
COS_M = math.cos(M)
SIN_M = math.sin(M)

_PART_SUBLANES = 8
_PART_LANES = 128


def _hgnn_loss_tile_kernel(x_ref, labels_ref, part_ref, *, n_valid, tile_rows):
    i = pl.program_id(0)
    x = x_ref[...].astype(jnp.float32)          # (tile_rows, C)
    labels = labels_ref[...]                    # (tile_rows, 1) int32
    tr, c = x.shape

    # validity mask for padded tail rows (N not a multiple of tile_rows)
    row_idx = i * tile_rows + jax.lax.broadcasted_iota(jnp.int32, (tr, 1), 0)
    valid = (row_idx < n_valid).astype(jnp.float32)                 # (tr, 1)

    # one-hot target-class mask via a single vectorized iota compare
    col = jax.lax.broadcasted_iota(jnp.int32, (tr, c), 1)
    onehot = (col == labels).astype(jnp.float32)                    # (tr, C)

    # ---- row L2 normalization: rsqrt + multiply (matches F.normalize eps) ----
    sumsq = jnp.sum(x * x, axis=1, keepdims=True)                   # (tr, 1)
    safe_sumsq = jnp.maximum(sumsq, NORM_EPS * NORM_EPS)
    inv_norm = jax.lax.rsqrt(safe_sumsq)                            # (tr, 1)
    xn = x * inv_norm                                               # (tr, C)
    row_norm = jnp.sqrt(safe_sumsq)                                 # (tr, 1) = max(||x||, eps)

    # target cosine xn[i, labels[i]] — the only masked (N,C) reduction needed
    target_cos = jnp.sum(xn * onehot, axis=1, keepdims=True)        # (tr, 1)

    # ---- arcface numerator: s*cos(acos(clamp(t)) + m) == s*(t*cos m - sqrt(1-t^2)*sin m)
    t = jnp.clip(target_cos, -1.0 + EPS, 1.0 - EPS)
    numerator = S * (t * COS_M - jnp.sqrt(1.0 - t * t) * SIN_M)     # (tr, 1)

    # ---- arcface denominator: exclusion done algebraically (unclamped target_cos)
    exp_all = jnp.exp(S * xn)                                       # (tr, C)
    sum_all = jnp.sum(exp_all, axis=1, keepdims=True)               # (tr, 1)
    sum_excl = sum_all - jnp.exp(S * target_cos)                    # (tr, 1)
    denominator = jnp.exp(numerator) + sum_excl
    L = numerator - jnp.log(denominator)                            # (tr, 1)
    sum_L = jnp.sum(L * valid)                                      # scalar partial

    # ---- CrossEntropyLoss(reduction='sum') on the raw logits x ----
    row_max = jnp.max(x, axis=1, keepdims=True)
    lse = row_max + jnp.log(jnp.sum(jnp.exp(x - row_max), axis=1, keepdims=True))
    target_logit = target_cos * row_norm                            # == x[i, labels[i]]
    sum_ce = jnp.sum((lse - target_logit) * valid)                  # scalar partial

    # ---- write an (8,128) lane-dense partial slab: [0,0]=sum_L, [0,1]=sum_ce ----
    sub = jax.lax.broadcasted_iota(jnp.int32, (_PART_SUBLANES, _PART_LANES), 0)
    lane = jax.lax.broadcasted_iota(jnp.int32, (_PART_SUBLANES, _PART_LANES), 1)
    slab = jnp.where((sub == 0) & (lane == 0), sum_L,
                     jnp.where((sub == 0) & (lane == 1), sum_ce, 0.0))
    part_ref[0] = slab


def _choose_tile_rows(n, c, max_tile_bytes=2 * 1024 * 1024):
    """8-aligned row tile, capped by an ~2 MiB f32 input tile (v7x-safe) and 512 rows."""
    rows_by_vmem = max(8, (max_tile_bytes // (c * 4)) // 8 * 8)
    tr = min(512, rows_by_vmem)
    n_pad8 = ((n + 7) // 8) * 8
    tr = min(tr, n_pad8)
    return max(8, (tr // 8) * 8)


def hgnn_loss(x, labels, tile_rows=None):
    """x: (N, C) float, labels: (N,) int in [0, C). Returns scalar float32."""
    x = x.astype(jnp.float32)
    n, c = x.shape
    if tile_rows is None:
        tile_rows = _choose_tile_rows(n, c)
    assert tile_rows % 8 == 0
    num_tiles = -(-n // tile_rows)              # cdiv
    n_pad = num_tiles * tile_rows

    x_p = jnp.pad(x, ((0, n_pad - n), (0, 0)))
    labels_p = jnp.pad(labels.astype(jnp.int32), (0, n_pad - n)).reshape(n_pad, 1)

    kernel = partial(_hgnn_loss_tile_kernel, n_valid=n, tile_rows=tile_rows)

    partials = pl.pallas_call(
        kernel,
        out_shape=jax.ShapeDtypeStruct(
            (num_tiles, _PART_SUBLANES, _PART_LANES), jnp.float32),
        grid=(num_tiles,),
        in_specs=[
            pl.BlockSpec((tile_rows, c), lambda i: (i, 0)),
            pl.BlockSpec((tile_rows, 1), lambda i: (i, 0)),
        ],
        out_specs=pl.BlockSpec(
            (1, _PART_SUBLANES, _PART_LANES), lambda i: (i, 0, 0)),
        compiler_params=pltpu.CompilerParams(
            dimension_semantics=("parallel",),
            vmem_limit_bytes=32 * 1024 * 1024,
        ),
    )(x_p, labels_p)

    sum_L = jnp.sum(partials[:, 0, 0])
    sum_ce = jnp.sum(partials[:, 0, 1])
    arc_loss = -(sum_L / n)                     # mean over the FULL batch
    return arc_loss + sum_ce


def hgnn_loss_ref(x, labels):
    """Pure-JAX reference matching the PyTorch forward, for verification."""
    x = x.astype(jnp.float32)
    n, c = x.shape
    onehot = jax.nn.one_hot(labels, c, dtype=jnp.float32)
    row_norm = jnp.sqrt(jnp.sum(x * x, axis=1, keepdims=True))
    xn = x / jnp.maximum(row_norm, NORM_EPS)
    t = jnp.clip(jnp.sum(xn * onehot, axis=1), -1.0 + EPS, 1.0 - EPS)
    numerator = S * jnp.cos(jnp.arccos(t) + M)
    sum_excl = jnp.sum(jnp.exp(S * xn) * (1.0 - onehot), axis=1)
    L = numerator - jnp.log(jnp.exp(numerator) + sum_excl)
    arc = -jnp.mean(L)
    lse = jax.scipy.special.logsumexp(x, axis=1)
    ce = jnp.sum(lse - jnp.sum(x * onehot, axis=1))
    return arc + ce


if __name__ == "__main__":
    # in_features == out_features == C (the fc layer is unused in forward)
    N, C = 8, 32

    key = jax.random.PRNGKey(0)
    kx, kl, kx2, kl2 = jax.random.split(key, 4)
    x = jax.random.normal(kx, (N, C), dtype=jnp.float32)
    labels = jax.random.randint(kl, (N,), 0, C, dtype=jnp.int32)

    loss = jax.block_until_ready(hgnn_loss(x, labels))
    ref = jax.block_until_ready(hgnn_loss_ref(x, labels))
    assert jnp.isfinite(loss), "kernel produced non-finite loss"
    assert jnp.allclose(loss, ref, rtol=1e-4, atol=1e-3), (loss, ref)

    # exercise the multi-tile + padded-tail path at small shapes:
    # N=40 with 16-row tiles -> 3 grid steps, last tile has 8 masked padded rows
    N2, C2 = 40, 32
    x2 = jax.random.normal(kx2, (N2, C2), dtype=jnp.float32)
    labels2 = jax.random.randint(kl2, (N2,), 0, C2, dtype=jnp.int32)
    loss2 = jax.block_until_ready(hgnn_loss(x2, labels2, tile_rows=16))
    ref2 = jax.block_until_ready(hgnn_loss_ref(x2, labels2))
    assert jnp.isfinite(loss2), "kernel produced non-finite loss (tiled path)"
    assert jnp.allclose(loss2, ref2, rtol=1e-4, atol=1e-3), (loss2, ref2)

    print("KERNEL_OK")
</pallas_src>

<mosaic_0001>
module attributes {stable_mosaic.version = 11 : i64} {
  func.func @_hgnn_loss_tile_kernel(%arg0: i32, %arg1: memref<8x32xf32, #tpu.memory_space<vmem>>, %arg2: memref<8x1xi32, #tpu.memory_space<vmem>>, %arg3: memref<1x8x128xf32, #tpu.memory_space<vmem>>) attributes {dimension_semantics = [#tpu.dimension_semantics<parallel>], iteration_bounds = array<i64: 1>, scalar_prefetch = 0 : i64, scratch_operands = 0 : i64, tpu.core_type = #tpu.core_type<tc>, window_params = [{transform_indices = @transform_0, window_bounds = array<i64: 8, 32>}, {transform_indices = @transform_1, window_bounds = array<i64: 8, 1>}, {transform_indices = @transform_2, window_bounds = array<i64: 1, 8, 128>}]} {
    %c0 = arith.constant 0 : index
    %c0_0 = arith.constant 0 : index
    %0 = vector.load %arg1[%c0, %c0_0] : memref<8x32xf32, #tpu.memory_space<vmem>>, vector<8x32xf32>
    %c0_1 = arith.constant 0 : index
    %c0_2 = arith.constant 0 : index
    %1 = vector.load %arg2[%c0_1, %c0_2] : memref<8x1xi32, #tpu.memory_space<vmem>>, vector<8x1xi32>
    %c8_i32 = arith.constant 8 : i32
    %2 = arith.muli %arg0, %c8_i32 : i32
    %3 = tpu.iota {dimensions = array<i32: 0>} : vector<8x1xi32>
    %4 = vector.broadcast %2 : i32 to vector<8x1xi32>
    %5 = arith.addi %4, %3 : vector<8x1xi32>
    %c8_i32_3 = arith.constant 8 : i32
    %6 = vector.broadcast %c8_i32_3 : i32 to vector<8x1xi32>
    %7 = arith.cmpi slt, %5, %6 : vector<8x1xi32>
    %8 = arith.extui %7 : vector<8x1xi1> to vector<8x1xi32>
    %9 = arith.sitofp %8 : vector<8x1xi32> to vector<8x1xf32>
    %10 = tpu.iota {dimensions = array<i32: 1>} : vector<8x32xi32>
    %11 = vector.broadcast %1 : vector<8x1xi32> to vector<8x32xi32>
    %12 = arith.cmpi eq, %10, %11 : vector<8x32xi32>
    %13 = arith.extui %12 : vector<8x32xi1> to vector<8x32xi32>
    %14 = arith.sitofp %13 : vector<8x32xi32> to vector<8x32xf32>
    %15 = arith.mulf %0, %0 : vector<8x32xf32>
    %cst = arith.constant dense<0.000000e+00> : vector<8xf32>
    %16 = vector.multi_reduction <add>, %15, %cst [1] : vector<8x32xf32> to vector<8xf32>
    %17 = vector.shape_cast %16 : vector<8xf32> to vector<8x1xf32>
    %cst_4 = arith.constant 1.000000e-24 : f32
    %18 = vector.broadcast %cst_4 : f32 to vector<8x1xf32>
    %19 = arith.maximumf %17, %18 : vector<8x1xf32>
    %20 = math.rsqrt %19 : vector<8x1xf32>
    %21 = vector.broadcast %20 : vector<8x1xf32> to vector<8x32xf32>
    %22 = arith.mulf %0, %21 : vector<8x32xf32>
    %23 = math.sqrt %19 : vector<8x1xf32>
    %24 = arith.mulf %22, %14 : vector<8x32xf32>
    %cst_5 = arith.constant dense<0.000000e+00> : vector<8xf32>
    %25 = vector.multi_reduction <add>, %24, %cst_5 [1] : vector<8x32xf32> to vector<8xf32>
    %26 = vector.shape_cast %25 : vector<8xf32> to vector<8x1xf32>
    %cst_6 = arith.constant -0.99999988 : f32
    %cst_7 = arith.constant 0.99999988 : f32
    %27 = vector.broadcast %cst_6 : f32 to vector<8x1xf32>
    %28 = arith.maximumf %27, %26 : vector<8x1xf32>
    %29 = vector.broadcast %cst_7 : f32 to vector<8x1xf32>
    %30 = arith.minimumf %29, %28 : vector<8x1xf32>
    %cst_8 = arith.constant 0.87758255 : f32
    %31 = vector.broadcast %cst_8 : f32 to vector<8x1xf32>
    %32 = arith.mulf %30, %31 : vector<8x1xf32>
    %33 = arith.mulf %30, %30 : vector<8x1xf32>
    %cst_9 = arith.constant 1.000000e+00 : f32
    %34 = vector.broadcast %cst_9 : f32 to vector<8x1xf32>
    %35 = arith.subf %34, %33 : vector<8x1xf32>
    %36 = math.sqrt %35 : vector<8x1xf32>
    %cst_10 = arith.constant 0.47942555 : f32
    %37 = vector.broadcast %cst_10 : f32 to vector<8x1xf32>
    %38 = arith.mulf %36, %37 : vector<8x1xf32>
    %39 = arith.subf %32, %38 : vector<8x1xf32>
    %cst_11 = arith.constant 6.400000e+01 : f32
    %40 = vector.broadcast %cst_11 : f32 to vector<8x1xf32>
    %41 = arith.mulf %40, %39 : vector<8x1xf32>
    %cst_12 = arith.constant 6.400000e+01 : f32
    %42 = vector.broadcast %cst_12 : f32 to vector<8x32xf32>
    %43 = arith.mulf %42, %22 : vector<8x32xf32>
    %44 = math.exp %43 : vector<8x32xf32>
    %cst_13 = arith.constant dense<0.000000e+00> : vector<8xf32>
    %45 = vector.multi_reduction <add>, %44, %cst_13 [1] : vector<8x32xf32> to vector<8xf32>
    %46 = vector.shape_cast %45 : vector<8xf32> to vector<8x1xf32>
    %cst_14 = arith.constant 6.400000e+01 : f32
    %47 = vector.broadcast %cst_14 : f32 to vector<8x1xf32>
    %48 = arith.mulf %47, %26 : vector<8x1xf32>
    %49 = math.exp %48 : vector<8x1xf32>
    %50 = arith.subf %46, %49 : vector<8x1xf32>
    %51 = math.exp %41 : vector<8x1xf32>
    %52 = arith.addf %51, %50 : vector<8x1xf32>
    %53 = math.log %52 : vector<8x1xf32>
    %54 = arith.subf %41, %53 : vector<8x1xf32>
    %55 = arith.mulf %54, %9 : vector<8x1xf32>
    %56 = vector.shape_cast %55 : vector<8x1xf32> to vector<1x8x1xf32>
    %cst_15 = arith.constant dense<0.000000e+00> : vector<1xf32>
    %57 = vector.multi_reduction <add>, %56, %cst_15 [1, 2] : vector<1x8x1xf32> to vector<1xf32>
    %58 = vector.shape_cast %57 : vector<1xf32> to vector<1x1x1xf32>
    %59 = vector.extract %58[0, 0, 0] : f32 from vector<1x1x1xf32>
    %cst_16 = arith.constant dense<0xFF800000> : vector<8xf32>
    %60 = vector.multi_reduction <maximumf>, %0, %cst_16 [1] : vector<8x32xf32> to vector<8xf32>
    %61 = vector.shape_cast %60 : vector<8xf32> to vector<8x1xf32>
    %62 = vector.broadcast %61 : vector<8x1xf32> to vector<8x32xf32>
    %63 = arith.subf %0, %62 : vector<8x32xf32>
    %64 = math.exp %63 : vector<8x32xf32>
    %cst_17 = arith.constant dense<0.000000e+00> : vector<8xf32>
    %65 = vector.multi_reduction <add>, %64, %cst_17 [1] : vector<8x32xf32> to vector<8xf32>
    %66 = vector.shape_cast %65 : vector<8xf32> to vector<8x1xf32>
    %67 = math.log %66 : vector<8x1xf32>
    %68 = arith.addf %61, %67 : vector<8x1xf32>
    %69 = arith.mulf %26, %23 : vector<8x1xf32>
    %70 = arith.subf %68, %69 : vector<8x1xf32>
    %71 = arith.mulf %70, %9 : vector<8x1xf32>
    %72 = vector.shape_cast %71 : vector<8x1xf32> to vector<1x8x1xf32>
    %cst_18 = arith.constant dense<0.000000e+00> : vector<1xf32>
    %73 = vector.multi_reduction <add>, %72, %cst_18 [1, 2] : vector<1x8x1xf32> to vector<1xf32>
    %74 = vector.shape_cast %73 : vector<1xf32> to vector<1x1x1xf32>
    %75 = vector.extract %74[0, 0, 0] : f32 from vector<1x1x1xf32>
    %76 = tpu.iota {dimensions = array<i32: 0>} : vector<8x128xi32>
    %77 = tpu.iota {dimensions = array<i32: 1>} : vector<8x128xi32>
    %c0_i32 = arith.constant 0 : i32
    %78 = vector.broadcast %c0_i32 : i32 to vector<8x128xi32>
    %79 = arith.cmpi eq, %76, %78 : vector<8x128xi32>
    %c0_i32_19 = arith.constant 0 : i32
    %80 = vector.broadcast %c0_i32_19 : i32 to vector<8x128xi32>
    %81 = arith.cmpi eq, %77, %80 : vector<8x128xi32>
    %82 = arith.andi %79, %81 : vector<8x128xi1>
    %c0_i32_20 = arith.constant 0 : i32
    %83 = vector.broadcast %c0_i32_20 : i32 to vector<8x128xi32>
    %84 = arith.cmpi eq, %76, %83 : vector<8x128xi32>
    %c1_i32 = arith.constant 1 : i32
    %85 = vector.broadcast %c1_i32 : i32 to vector<8x128xi32>
    %86 = arith.cmpi eq, %77, %85 : vector<8x128xi32>
    %87 = arith.andi %84, %86 : vector<8x128xi1>
    %cst_21 = arith.constant 0.000000e+00 : f32
    %88 = vector.broadcast %75 : f32 to vector<8x128xf32>
    %89 = vector.broadcast %cst_21 : f32 to vector<8x128xf32>
    %90 = arith.select %87, %88, %89 : vector<8x128xi1>, vector<8x128xf32>
    %91 = vector.broadcast %59 : f32 to vector<8x128xf32>
    %92 = arith.select %82, %91, %90 : vector<8x128xi1>, vector<8x128xf32>
    %c0_22 = arith.constant 0 : index
    %c0_23 = arith.constant 0 : index
    %c0_24 = arith.constant 0 : index
    %93 = vector.load %arg3[%c0_22, %c0_23, %c0_24] : memref<1x8x128xf32, #tpu.memory_space<vmem>>, vector<1x8x128xf32>
    %94 = vector.shape_cast %93 : vector<1x8x128xf32> to vector<8x128xf32>
    %95 = vector.shape_cast %92 : vector<8x128xf32> to vector<1x8x128xf32>
    tpu.vector_store %arg3[%c0_22, %c0_23, %c0_24], %95 {strides = array<i32>} : memref<1x8x128xf32, #tpu.memory_space<vmem>>, vector<1x8x128xf32>,
    return
  }
  func.func @transform_0(%arg0: i32) -> (i32, i32) {
    %c0_i32 = arith.constant 0 : i32
    %c0_i32_0 = arith.constant 0 : i32
    return %arg0, %c0_i32 : i32, i32
  }
  func.func @transform_1(%arg0: i32) -> (i32, i32) {
    %c0_i32 = arith.constant 0 : i32
    %c0_i32_0 = arith.constant 0 : i32
    return %arg0, %c0_i32 : i32, i32
  }
  func.func @transform_2(%arg0: i32) -> (i32, i32, i32) {
    %c0_i32 = arith.constant 0 : i32
    %c0_i32_0 = arith.constant 0 : i32
    %c0_i32_1 = arith.constant 0 : i32
    return %arg0, %c0_i32, %c0_i32_0 : i32, i32, i32
  }
}

</mosaic_0001>

<bundles_post_ra>
// kernel: tpu_custom_call.1
= control target key start
LH: loop header
LB: loop body
LE: loop exit
PB: predicated region body
PF: predicated region fallthrough
CT: control target
= control target key end

     0   :  { %vm31_vm0 = vcmask 261120   ;;  %s239_s0 = inlined_call_operand.vmem [shape: f32[8,32], index: 0, kind: input, shape index: {}]   ;;  %s240_s1 = inlined_call_operand.vmem [shape: s32[8,1], index: 1, kind: input, shape index: {}]   ;;  %s241_s2 = inlined_call_operand.hbm [shape: f32[1,8,128], index: 2, kind: output, shape index: {}]  }
   0x1   :  { %v12_v0 = vld [vmem:[%s239_s0] sm:$0xff] }
   0x2   :  { %7 = vsyncpa [#allocation3], 0  ;;  %v30_v1 = vmul.f32 %v12_v0, %v12_v0  ;;  %v92_v2 = vsel %vm31_vm0, %v12_v0, -inf  ;;  %v191_v3 = vmov 0   ;;  %v13_v5 = vld [vmem:[%s240_s1] sm:$0xff]  ;;  %v15_v8 = vlaneseq  ;;  %s193_s1 = smov [#allocation2]  }
   0x3   :  { %150 = vset.pattern.permute.xlu0 %v191_v3  ;;  %93 = vmax.xlane.f32.xlu1 %v92_v2  ;;  %v192_v14 = vmov 0.0   ;;  %vm81_vm6 = vcmask 7168   ;;  %s133_s13 = sshll.u32 %s193_s1, 4  ;;  %s134_s13 = int_to_ptr.vmem [resolvable:$true] %s133_s13 }
   0x4   :  { %v32_v4 = vsel %vm31_vm0, %v30_v1, 0.0  ;;  %v218_v9 = vand.u32 127, %v15_v8  ;;  %s167_s15 = scalar_lea.vmem %s134_s13, 128  ;;  %p172_p1 = scmp.lt.s32.totalorder %s134_s13, %s134_s13 }
   0x5   :  { %33 = vadd.xlane.f32.xlu0 %v32_v4  ;;  %p168_p0 = scmp.ne.s32.totalorder %s134_s13, %s167_s15  ;;  %p173_p2 = scmp.lt.s32.totalorder %s167_s15, %s167_s15 }
   0x6   :  { %vm120_vm8 = vcmp.eq.s32.totalorder %v218_v9, 1  ;;  %vm118_vm9 = vcmp.eq.s32.totalorder %v218_v9, 0 }
   0x7   :  { %p174_p3 = por %p173_p2, %p172_p1 }
   0x9   :  { %p175_p4 = pnand %p174_p3, %p168_p0 }
  0x1b   :  { %25 = vperm.xlu0 %150, %v13_v5  }
  0x90   :  { %v94_v11 = vpop.xlane.xlu1 %93 }
  0x91   :  { %v95_v12 = vsub.f32 %v12_v0, %v94_v11 }
  0x92   :  { %v34_v6 = vpop.xlane.xlu0 %33 }
  0x93   :  { %v35_v7 = vmax.f32 %v34_v6, 1e-24  ;;  %v96_v18 = vmul.f32 1.442695, %v95_v12 }
  0x95   :  { %151 = vrsqrt.f32 %v35_v7  ;;  %vm40_vm2 = vcmp.eq.f32.partialorder %v35_v7, inf  ;;  %v43_v19 = vand.u32 2147483648, %v35_v7  ;;  %vm42_vm3 = vcmp.eq.f32.partialorder %v35_v7, 0.0 }
  0x96   :  { %153 = vpow2.f32 %v96_v18 }
  0x9a   :  { %v26_v10 = vpop.permute.xlu0 %25 }
  0x9b   :  { %vm27_vm1 = vcmp.eq.s32.totalorder %v218_v9, %v26_v10 }
  0x9c   :  { %v141_v15 = vsel %vm27_vm1, 1.0, %v192_v14  ;;  %v16_v14 = vshrl.u32 %v15_v8, 7 }
  0x9e   :  { %vm117_vm7 = vcmp.eq.s32.totalorder %v16_v14, 0 }
  0x9f   :  { %v152_v13 = vpop.eup %151  ;;  %vm121_vm10 = vmand %vm117_vm7, %vm120_vm8 }
  0xa0   :  { %v37_v16 = vmul.f32 %v152_v13, %v12_v0  ;;  %v39_v17 = vmul.f32 %v152_v13, %v35_v7  ;;  %v154_v26 = vpop.eup %153  ;;  %vm119_vm11 = vmand %vm117_vm7, %vm118_vm9 }
  0xa1   :  { %v98_v29 = vsel %vm31_vm0, %v154_v26, 0.0 }
  0xa2   :  { %v45_v20 = vmul.f32 %v141_v15, %v37_v16  ;;  %v64_v21 = vmul.f32 64.0, %v37_v16  ;;  %v41_v22 = vsel %vm40_vm2, %v35_v7, %v39_v17 }
  0xa3   :  { %v44_v23 = vsel %vm42_vm3, %v43_v19, %v41_v22 }
  0xa4   :  { %v46_v24 = vsel %vm31_vm0, %v45_v20, 0.0  ;;  %v65_v25 = vmul.f32 1.442695, %v64_v21 }
  0xa5   :  { %47 = vadd.xlane.f32.xlu1 %v46_v24 }
  0xa6   :  { %155 = vpow2.f32 %v65_v25 }
  0xb0   :  { %v156_v27 = vpop.eup %155 }
  0xb1   :  { %v67_v28 = vsel %vm31_vm0, %v156_v27, 0.0 }
  0xb2   :  { %68 = vadd.xlane.f32.xlu1 %v67_v28 }
  0xb6   :  { %99 = vadd.xlane.f32.xlu1 %v98_v29 }
 0x132   :  { %v48_v30 = vpop.xlane.xlu1 %47 }
 0x133   :  { %v142_v31 = vclamps-f32 %v48_v30, 0.9999999  ;;  %v70_v36 = vmul.f32 64.0, %v48_v30  ;;  %v104_v57 = vmul.f32 %v48_v30, %v44_v23 }
 0x135   :  { %v52_v32 = vmul.f32 %v142_v31, %v142_v31  ;;  %v51_v40 = vmul.f32 0.87758255, %v142_v31  ;;  %v71_v42 = vmul.f32 1.442695, %v70_v36 }
 0x137   :  { %v53_v33 = vsub.f32 1.0, %v52_v32 }
 0x139   :  { %157 = vrsqrt.f32 %v53_v33  ;;  %vm56_vm4 = vcmp.eq.f32.partialorder %v53_v33, inf  ;;  %v59_v37 = vand.u32 2147483648, %v53_v33  ;;  %vm58_vm5 = vcmp.eq.f32.partialorder %v53_v33, 0.0 }
 0x13a   :  { %159 = vpow2.f32 %v71_v42 }
 0x13f   :  { %v69_v46 = vpop.xlane.xlu1 %68 }
 0x143   :  { %v158_v34 = vpop.eup %157  ;;  %v100_v47 = vpop.xlane.xlu1 %99 }
 0x144   :  { %v55_v35 = vmul.f32 %v158_v34, %v53_v33  ;;  %v160_v48 = vpop.eup %159 }
 0x145   :  { %v73_v49 = vsub.f32 %v69_v46, %v160_v48 }
 0x146   :  { %v57_v38 = vsel %vm56_vm4, %v53_v33, %v55_v35 }
 0x147   :  { %v60_v39 = vsel %vm58_vm5, %v59_v37, %v57_v38 }
 0x148   :  { %v61_v41 = vmul.f32 0.47942555, %v60_v39 }
 0x14a   :  { %v62_v43 = vsub.f32 %v51_v40, %v61_v41 }
 0x14c   :  { %v63_v44 = vmul.f32 64.0, %v62_v43 }
 0x14e   :  { %v74_v45 = vmul.f32 1.442695, %v63_v44 }
 0x150   :  { %161 = vpow2.f32 %v74_v45 }
 0x151   :  { %163 = vlog2.f32 %v100_v47 }
 0x15a   :  { %v162_v50 = vpop.eup %161 }
 0x15b   :  { %v76_v51 = vadd.f32 %v162_v50, %v73_v49  ;;  %v164_v52 = vpop.eup %163 }
 0x15c   :  { %v102_v53 = vmul.f32 0.6931472, %v164_v52 }
 0x15d   :  { %165 = vlog2.f32 %v76_v51 }
 0x15e   :  { %v103_v56 = vadd.f32 %v102_v53, %v94_v11 }
 0x160   :  { %v105_v60 = vsub.f32 %v103_v56, %v104_v57 }
 0x162   :  { %v107_v61 = vsel %vm81_vm6, %v105_v60, 0.0 }
 0x167   :  { %v166_v54 = vpop.eup %165 }
 0x168   :  { %v78_v55 = vmul.f32 0.6931472, %v166_v54 }
 0x16a   :  { %v79_v58 = vsub.f32 %v63_v44, %v78_v55 }
 0x16c   :  { %v82_v59 = vsel %vm81_vm6, %v79_v58, 0.0 }
 0x16d   :  { %83 = vadd.xlane.f32.xlu1 %v82_v59 }
 0x171   :  { %108 = vadd.xlane.f32.xlu1 %v107_v61 }
 0x1fa   :  { %v84_v62 = vpop.xlane.xlu1 %83 }
 0x1fb   :  { %v85_v63 = vrot.slane %v84_v62, 4 }
 0x1fd   :  { %v86_v0 = vadd.f32 %v85_v63, %v84_v62 }
 0x1fe   :  { %v109_v1 = vpop.xlane.xlu1 %108 }
 0x1ff   :  { %v87_v2 = vrot.slane %v86_v0, 2  ;;  %v110_v3 = vrot.slane %v109_v1, 4 }
 0x201   :  { %v111_v4 = vadd.f32 %v110_v3, %v109_v1  ;;  %v88_v5 = vadd.f32 %v87_v2, %v86_v0 }
 0x203   :  { %v112_v6 = vrot.slane %v111_v4, 2  ;;  %v89_v7 = vrot.slane %v88_v5, 1 }
 0x205   :  { %v113_v10 = vadd.f32 %v112_v6, %v111_v4  ;;  %v90_v11 = vadd.f32 %v89_v7, %v88_v5 }
 0x207   :  { %143 = vpush %v90_v11  ;;  %v114_v12 = vrot.slane %v113_v10, 1 }
 0x209   :  { %v115_v13 = vadd.f32 %v114_v12, %v113_v10 }
 0x20b   :  { %145 = vpush %v115_v13 }
 0x238   :  { %s144_s0 = spop %143 }
 0x239   :  { %v124_v16 = vstv %s144_s0 }
 0x23c   :  { %s146_s14 = spop %145 }
 0x23d   :  { %v122_v15 = vstv %s146_s14 }
 0x23e   :  { %v123_v17 = vsel %vm121_vm10, %v122_v15, 0.0 }
 0x23f   :  { %v125_v18 = vsel %vm119_vm11, %v124_v16, %v123_v17 }
 0x240   :  { %126 = vst [vmem:[#allocation2] sm:$0xff] %v125_v18 }
 0x241   :  { %178 = shalt.err (!%p175_p4)
}
 0x242   :  { %s179_s18 = scalar_lea.hbm %s241_s2, 128 }
 0x243   :  { %p180_p5 = scmp.ne.s32.totalorder %s241_s2, %s179_s18  ;;  %p183_p6 = scmp.lt.u32.totalorder %s179_s18, %s241_s2 }
 0x245   :  { %p185_p7 = pnand %p183_p6, %p180_p5 }
 0x247   :  { %188 = shalt.err (!%p185_p7)
}
 0x248   :  { %136 = dma.vmem_to_hbm [thread:$0]  %s134_s13, 128, %s241_s2, [#allocation3]  }
 0x249   :  { %189 = dma.done.wait [#allocation3], 128  }
 0x24a   :  { %190 = vsyncadd [#allocation3], 4294967168 }
 0x24b   :  { %140 = vsyncpa [#allocation3], 1 }

</bundles_post_ra>
